<compile_context>
chip_gen: v5e
topology: v5e:2x2
jax: 0.10.0
libtpu: 0.0.40
codegen_flags: <defaults>
</compile_context>

<pallas_src>
import jax
import jax.numpy as jnp
from jax import lax
from jax.experimental import pallas as pl
from jax.experimental.pallas import tpu as pltpu

# ---------------- model constants (from SRCNet.__init__) ----------------
DIM = 256
PATCH = 8
N1 = 4          # FEStage blocks
N2 = 4          # CPBlocks
K_GROUPS = 16   # PMFFM k
M_BRANCH = 8    # PMFFM m
CHUNK = DIM // K_GROUPS  # 16

# PMFFM sign lines (constants in the torch module)
D1LINE = [1.0] * (M_BRANCH // 2) + [1.0] * (M_BRANCH // 4) + [-1.0] * (M_BRANCH // 4)
D2LINE = [1.0] * (M_BRANCH // 2) + [-1.0] * (M_BRANCH // 4) + [1.0] * (M_BRANCH // 4)


# ---------------- tiling helpers ----------------
def _row_tile(R, cap=512):
    """Largest multiple of 8 (<= cap) dividing R; falls back to the full extent."""
    t = min(R, cap)
    t -= t % 8
    while t >= 8:
        if R % t == 0:
            return t
        t -= 8
    return R


def _batch_chunk(B, H, W, C, budget=6 << 20):
    """Images per SRCBlock grid step; keeps the (H*W, 4C) f32 intermediate small
    so default scoped VMEM is enough even on v7x (64 MiB physical)."""
    per = H * W * 4 * C * 4
    gb = int(max(1, min(B, budget // per)))
    while B % gb:
        gb -= 1
    return gb


# ======================= generic row-tiled linear kernel =======================
def _linear_kernel(x_ref, w_ref, b_ref, o_ref):
    o_ref[...] = (jnp.dot(x_ref[...], w_ref[...],
                          preferred_element_type=jnp.float32) + b_ref[...])


def linear_pallas(x, w, b):
    R, K = x.shape
    N = w.shape[1]
    TR = _row_tile(R)
    return pl.pallas_call(
        _linear_kernel,
        out_shape=jax.ShapeDtypeStruct((R, N), jnp.float32),
        grid=(R // TR,),
        in_specs=[pl.BlockSpec((TR, K), lambda i: (i, 0)),
                  pl.BlockSpec((K, N), lambda i: (0, 0)),
                  pl.BlockSpec((1, N), lambda i: (0, 0))],
        out_specs=pl.BlockSpec((TR, N), lambda i: (i, 0)),
        compiler_params=pltpu.CompilerParams(
            dimension_semantics=("parallel",)),
    )(x, w, b.reshape(1, N))


# ======================= fused SRCBlock kernel =======================
# single 25-tap depthwise conv (1x1+3x3+5x5 folded, /3 + biases folded)
#   -> LayerNorm(channels_first) -> Linear(dim,4dim) -> GELU -> GRN
#   -> Linear(4dim,dim) -> residual.
def _srcblock_kernel(xpad_ref, dwc_ref, dbc_ref, lnw_ref, lnb_ref,
                     pw1_ref, pb1_ref, gg_ref, gb_ref, pw2_ref, pb2_ref, o_ref):
    GB, Hp, Wp, C = xpad_ref.shape
    H, W = Hp - 4, Wp - 4
    C4 = pw1_ref.shape[1]

    xpad = xpad_ref[...]                       # (GB, H+4, W+4, C)
    x = xpad[:, 2:2 + H, 2:2 + W, :]           # residual view (no extra DMA)

    # fused 25-tap depthwise conv
    acc = jnp.zeros((GB, H, W, C), jnp.float32)
    for i in range(5):
        for j in range(5):
            acc = acc + xpad[:, i:i + H, j:j + W, :] * dwc_ref[i * 5 + j]
    y = acc + dbc_ref[0]

    # flatten rows for lane-dense LN / MLP work
    y = y.reshape(GB * H * W, C)
    u = jnp.mean(y, axis=-1, keepdims=True)
    s = jnp.mean((y - u) ** 2, axis=-1, keepdims=True)
    y = (y - u) * lax.rsqrt(s + 1e-6)
    y = y * lnw_ref[0] + lnb_ref[0]

    h = jnp.dot(y, pw1_ref[...], preferred_element_type=jnp.float32) + pb1_ref[0]
    h = jax.nn.gelu(h, approximate=False)      # torch nn.GELU() is exact

    # GRN: L2 norm over (H, W) per image, per channel
    h3 = h.reshape(GB, H * W, C4)
    gx = jnp.sqrt(jnp.sum(h3 * h3, axis=1, keepdims=True))        # (GB, 1, 4C)
    nx = gx / (jnp.mean(gx, axis=-1, keepdims=True) + 1e-6)
    h3 = gg_ref[0] * (h3 * nx) + gb_ref[0] + h3
    h = h3.reshape(GB * H * W, C4)

    h = jnp.dot(h, pw2_ref[...], preferred_element_type=jnp.float32) + pb2_ref[0]

    # residual (drop_path identity in eval)
    o_ref[...] = x + h.reshape(GB, H, W, C)


def srcblock_apply(x_nhwc, p):
    B, H, W, C = x_nhwc.shape
    C4 = 4 * C

    # fold 1x1 + 3x3 + 5x5 depthwise weights (and the /3) into one 25-tap filter
    dw2_25 = jnp.pad(p["dw2"].reshape(3, 3, C), ((1, 1), (1, 1), (0, 0))).reshape(25, C)
    dw1_25 = jnp.pad(p["dw1"].reshape(1, 1, C), ((2, 2), (2, 2), (0, 0))).reshape(25, C)
    dwc = (p["dw3"] + dw2_25 + dw1_25) / 3.0
    dbc = (p["db1"] + p["db2"] + p["db3"]) / 3.0

    xpad = jnp.pad(x_nhwc, ((0, 0), (2, 2), (2, 2), (0, 0)))
    GB = _batch_chunk(B, H, W, C)

    return pl.pallas_call(
        _srcblock_kernel,
        out_shape=jax.ShapeDtypeStruct((B, H, W, C), jnp.float32),
        grid=(B // GB,),
        in_specs=[pl.BlockSpec((GB, H + 4, W + 4, C), lambda b: (b, 0, 0, 0)),
                  pl.BlockSpec((25, C), lambda b: (0, 0)),
                  pl.BlockSpec((1, C), lambda b: (0, 0)),
                  pl.BlockSpec((1, C), lambda b: (0, 0)),
                  pl.BlockSpec((1, C), lambda b: (0, 0)),
                  pl.BlockSpec((C, C4), lambda b: (0, 0)),
                  pl.BlockSpec((1, C4), lambda b: (0, 0)),
                  pl.BlockSpec((1, C4), lambda b: (0, 0)),
                  pl.BlockSpec((1, C4), lambda b: (0, 0)),
                  pl.BlockSpec((C4, C), lambda b: (0, 0)),
                  pl.BlockSpec((1, C), lambda b: (0, 0))],
        out_specs=pl.BlockSpec((GB, H, W, C), lambda b: (b, 0, 0, 0)),
        compiler_params=pltpu.CompilerParams(
            dimension_semantics=("parallel",)),
    )(xpad, dwc, dbc, p["lnw"], p["lnb"], p["pw1"], p["pb1"],
      p["gg"], p["gb"], p["pw2"], p["pb2"])


# ======================= fused FE-stage PIM kernel =======================
# One kernel per FE iteration: 4 distinct sigmoid(W@x) matmuls shared across the
# four PIM evaluations, plus the two diff-MSE partial sums.
def _fes_pim_kernel(x1_ref, x1w_ref, x2_ref, x2w_ref, w_ref, b_ref,
                    y1_ref, y2_ref, d_ref):
    x1, x1w = x1_ref[...], x1w_ref[...]
    x2, x2w = x2_ref[...], x2w_ref[...]
    w, b = w_ref[...], b_ref[...]

    s1 = jax.nn.sigmoid(jnp.dot(x1, w, preferred_element_type=jnp.float32) + b)
    s1w = jax.nn.sigmoid(jnp.dot(x1w, w, preferred_element_type=jnp.float32) + b)
    s2 = jax.nn.sigmoid(jnp.dot(x2, w, preferred_element_type=jnp.float32) + b)
    s2w = jax.nn.sigmoid(jnp.dot(x2w, w, preferred_element_type=jnp.float32) + b)

    def pim(p1, a, p2, bb):
        p1 = p1 * 0.5 + 0.5                    # P1 * (1 - b) + b with b = 0.5
        return p1 * a + (1.0 - p1) * p2 * bb + (1.0 - p1) * (1.0 - p2) * (a + bb) * 0.5

    d1 = pim(s1, x1, s1w, x1w) - x1
    d2 = pim(s2, x2, s2w, x2w) - x2
    y1_ref[...] = pim(s1, x1, s2, x2)
    y2_ref[...] = pim(s2, x2, s1, x1)

    sub = lax.broadcasted_iota(jnp.int32, (8, 128), 0)
    d_ref[...] = jnp.where(sub < 4, jnp.sum(d1 * d1), jnp.sum(d2 * d2))


def fes_pim_apply(x1, x1w, x2, x2w, p):
    B, H, W, C = x1.shape
    R = B * H * W
    TR = _row_tile(R)
    nt = R // TR
    r = lambda z: z.reshape(R, C)
    y1, y2, dpart = pl.pallas_call(
        _fes_pim_kernel,
        out_shape=(jax.ShapeDtypeStruct((R, C), jnp.float32),
                   jax.ShapeDtypeStruct((R, C), jnp.float32),
                   jax.ShapeDtypeStruct((nt * 8, 128), jnp.float32)),
        grid=(nt,),
        in_specs=[pl.BlockSpec((TR, C), lambda i: (i, 0)),
                  pl.BlockSpec((TR, C), lambda i: (i, 0)),
                  pl.BlockSpec((TR, C), lambda i: (i, 0)),
                  pl.BlockSpec((TR, C), lambda i: (i, 0)),
                  pl.BlockSpec((C, C), lambda i: (0, 0)),
                  pl.BlockSpec((1, C), lambda i: (0, 0))],
        out_specs=(pl.BlockSpec((TR, C), lambda i: (i, 0)),
                   pl.BlockSpec((TR, C), lambda i: (i, 0)),
                   pl.BlockSpec((8, 128), lambda i: (i, 0))),
        compiler_params=pltpu.CompilerParams(
            dimension_semantics=("parallel",)),
    )(r(x1), r(x1w), r(x2), r(x2w), p["w"], p["b"])
    s1 = jnp.sum(dpart[0::8, 0])
    s2 = jnp.sum(dpart[4::8, 0])
    return y1.reshape(B, H, W, C), y2.reshape(B, H, W, C), s1, s2


# ======================= fused PMFFM kernel (lane-dense) =======================
def _pmffm_kernel(x1_ref, x2_ref, wp_ref, pbd_ref, gsum_ref, ecat_ref,
                  ws_ref, wt_ref, rbd_ref, o_ref):
    C = x1_ref.shape[1]
    x1 = x1_ref[...]
    x2 = x2_ref[...]
    s = x1 + x2                                # branches 0..3 input
    t = x1 - x2                                # branches 4..7 (+/-) input

    # per-group prob = softmax over m (dense block-diagonal weight)
    logits = jnp.dot(s, wp_ref[...], preferred_element_type=jnp.float32) + pbd_ref[...]
    mx = jnp.max(logits, axis=-1, keepdims=True)     # constant per row => per group
    e = jnp.exp(logits - mx)
    den = jnp.dot(e, gsum_ref[...], preferred_element_type=jnp.float32)
    prob = e / den                                   # (TR, k*m)
    # expand per-(group,branch) prob to per-(branch,channel) columns
    pe = jnp.dot(prob, ecat_ref[...], preferred_element_type=jnp.float32)  # (TR, m*C)

    res_s = jnp.dot(s, ws_ref[...], preferred_element_type=jnp.float32)    # (TR, 4C)
    res_t = jnp.dot(t, wt_ref[...], preferred_element_type=jnp.float32)    # (TR, 4C)

    acc = jnp.zeros_like(x1)
    for g in range(M_BRANCH):
        res = res_s if g < M_BRANCH // 2 else res_t
        off = (g % (M_BRANCH // 2)) * C
        acc = acc + pe[:, g * C:(g + 1) * C] * (res[:, off:off + C] + rbd_ref[g])
    o_ref[...] = acc


def pmffm_apply(x1_nhwc, x2_nhwc, p):
    B, H, W, C = x1_nhwc.shape
    k, c, m = K_GROUPS, CHUNK, M_BRANCH
    R = B * H * W
    TR = _row_tile(R)

    eye_k = jnp.eye(k, dtype=jnp.float32)
    eye_m = jnp.eye(m, dtype=jnp.float32)
    # dense per-group prob projection (C, k*m): rows (group, chan), cols (group, branch)
    wp = jnp.einsum('ab,cm->acbm', eye_k, p["pw"]).reshape(C, k * m)
    pbd = jnp.tile(p["pb"].reshape(1, m), (1, k))
    # within-group sum matrix for the softmax denominator
    gsum = jnp.einsum('ab,gh->agbh', eye_k,
                      jnp.ones((m, m), jnp.float32)).reshape(k * m, k * m)
    # expand per-(group,branch) prob to per-(branch, 256-channel) columns
    ecat = jnp.einsum('ab,gh,j->aghbj', eye_k, eye_m,
                      jnp.ones((c,), jnp.float32)).reshape(k * m, m * C)
    # block-diagonal branch weights; branches 4..7 act on +/-(x1-x2): fold the sign
    rw = p["rw"]
    ws = jnp.einsum('ab,gij->aigbj', eye_k, rw[:m // 2]).reshape(C, (m // 2) * C)
    sign_t = jnp.array(D1LINE[m // 2:], jnp.float32)          # [1, 1, -1, -1]
    wt = jnp.einsum('ab,gij->aigbj', eye_k,
                    rw[m // 2:] * sign_t[:, None, None]).reshape(C, (m // 2) * C)
    rbd = jnp.tile(p["rb"].reshape(m, c), (1, k))              # (m, C)

    out = pl.pallas_call(
        _pmffm_kernel,
        out_shape=jax.ShapeDtypeStruct((R, C), jnp.float32),
        grid=(R // TR,),
        in_specs=[pl.BlockSpec((TR, C), lambda i: (i, 0)),
                  pl.BlockSpec((TR, C), lambda i: (i, 0)),
                  pl.BlockSpec((C, k * m), lambda i: (0, 0)),
                  pl.BlockSpec((1, k * m), lambda i: (0, 0)),
                  pl.BlockSpec((k * m, k * m), lambda i: (0, 0)),
                  pl.BlockSpec((k * m, m * C), lambda i: (0, 0)),
                  pl.BlockSpec((C, (m // 2) * C), lambda i: (0, 0)),
                  pl.BlockSpec((C, (m // 2) * C), lambda i: (0, 0)),
                  pl.BlockSpec((m, C), lambda i: (0, 0))],
        out_specs=pl.BlockSpec((TR, C), lambda i: (i, 0)),
        compiler_params=pltpu.CompilerParams(
            dimension_semantics=("parallel",)),
    )(x1_nhwc.reshape(R, C), x2_nhwc.reshape(R, C),
      wp, pbd, gsum, ecat, ws, wt, rbd)
    return out.reshape(B, H, W, C)


# ======================= fused Repatch kernel =======================
# ConvTranspose(dim->2, k=s=8) on both inputs + per-position 2-channel softmax
# + cross combination, all lane-dense (128-wide output columns = (ch, ph, pw)).
def _repatch_kernel(x1_ref, x2_ref, w_ref, b_ref, o_ref):
    half = w_ref.shape[1] // 2
    za = jnp.dot(x1_ref[...], w_ref[...], preferred_element_type=jnp.float32) + b_ref[...]
    zb = jnp.dot(x2_ref[...], w_ref[...], preferred_element_type=jnp.float32) + b_ref[...]
    za_s = pltpu.roll(za, half, 1)             # partner-channel logits
    zb_s = pltpu.roll(zb, half, 1)
    ma = jnp.maximum(za, za_s)
    pa = jnp.exp(za - ma)
    pa = pa / (pa + jnp.exp(za_s - ma))        # softmax prob of own channel
    mb = jnp.maximum(zb, zb_s)
    pb = jnp.exp(zb - mb)
    pb = pb / (pb + jnp.exp(zb_s - mb))
    lane = lax.broadcasted_iota(jnp.int32, za.shape, 1)
    o_ref[...] = jnp.where(lane < half,
                           pa * pb + (1.0 - pa) * (1.0 - pb),      # sp channel 0
                           pa * (1.0 - pb) + (1.0 - pa) * pb)      # sp channel 1


def repatch_apply(x1_nhwc, x2_nhwc, p):
    B, H, W, C = x1_nhwc.shape
    P = PATCH
    R = B * H * W
    TR = _row_tile(R)
    n_out = 2 * P * P
    sp = pl.pallas_call(
        _repatch_kernel,
        out_shape=jax.ShapeDtypeStruct((R, n_out), jnp.float32),
        grid=(R // TR,),
        in_specs=[pl.BlockSpec((TR, C), lambda i: (i, 0)),
                  pl.BlockSpec((TR, C), lambda i: (i, 0)),
                  pl.BlockSpec((C, n_out), lambda i: (0, 0)),
                  pl.BlockSpec((1, n_out), lambda i: (0, 0))],
        out_specs=pl.BlockSpec((TR, n_out), lambda i: (i, 0)),
        compiler_params=pltpu.CompilerParams(
            dimension_semantics=("parallel",)),
    )(x1_nhwc.reshape(R, C), x2_nhwc.reshape(R, C),
      p["w"], p["b_full"].reshape(1, n_out))
    sp = sp.reshape(B, H, W, 2, P, P).transpose(0, 3, 1, 4, 2, 5)
    return sp.reshape(B, 2, H * P, W * P)      # NCHW


# ======================= fused output-head kernel =======================
# ConvTranspose(dim->32, k=s=8) -> BN(eval) -> GELU -> 1x1 conv(32->2), folded so
# the output is (rows, 2*P*P) = 128 lanes instead of N=2.
def _head_kernel(x_ref, w_ref, b_ref, sc_ref, sh_ref, wf_ref, fb_ref, o_ref):
    z = jnp.dot(x_ref[...], w_ref[...], preferred_element_type=jnp.float32) + b_ref[...]
    z = z * sc_ref[...] + sh_ref[...]
    z = jax.nn.gelu(z, approximate=False)
    o_ref[...] = (jnp.dot(z, wf_ref[...],
                          preferred_element_type=jnp.float32) + fb_ref[...])


def head_apply(x_nhwc, p):
    B, H, W, C = x_nhwc.shape
    P = PATCH
    R = B * H * W
    TR = _row_tile(R)
    n_up = 32 * P * P
    n_out = 2 * P * P
    upb = p["up_b_full"].reshape(1, n_up)
    sc = jnp.repeat(p["bn_scale"].reshape(-1), P * P).reshape(1, n_up)
    sh = jnp.repeat(p["bn_shift"].reshape(-1), P * P).reshape(1, n_up)
    # position-preserving fold of the 1x1 conv (32 -> 2)
    wf = jnp.einsum('co,pq->cpoq', p["final_w"],
                    jnp.eye(P * P, dtype=jnp.float32)).reshape(n_up, n_out)
    fb = jnp.repeat(p["final_b"].reshape(-1), P * P).reshape(1, n_out)
    out = pl.pallas_call(
        _head_kernel,
        out_shape=jax.ShapeDtypeStruct((R, n_out), jnp.float32),
        grid=(R // TR,),
        in_specs=[pl.BlockSpec((TR, C), lambda i: (i, 0)),
                  pl.BlockSpec((C, n_up), lambda i: (0, 0)),
                  pl.BlockSpec((1, n_up), lambda i: (0, 0)),
                  pl.BlockSpec((1, n_up), lambda i: (0, 0)),
                  pl.BlockSpec((1, n_up), lambda i: (0, 0)),
                  pl.BlockSpec((n_up, n_out), lambda i: (0, 0)),
                  pl.BlockSpec((1, n_out), lambda i: (0, 0))],
        out_specs=pl.BlockSpec((TR, n_out), lambda i: (i, 0)),
        compiler_params=pltpu.CompilerParams(
            dimension_semantics=("parallel",)),
    )(x_nhwc.reshape(R, C), p["up_w"], upb, sc, sh, wf, fb)
    out = out.reshape(B, H, W, 2, P, P).transpose(0, 3, 1, 4, 2, 5)
    return out.reshape(B, 2, H * P, W * P)     # NCHW


# ======================= JAX glue =======================
def patch_embed_pair(a_nchw, b_nchw, p):
    """PatchEmb on both inputs in one kernel: conv(3->64,k4s4) -> BN(eval) ->
    conv(64->256,k2s2) folded into a single affine map per 8x8x3 patch."""
    # NOTE: weight layouts are the ones produced by init_params below.  If real
    # torch weights are loaded, remember torch ConvTranspose2d/Conv2d store
    # (Cin, Cout, kH, kW) / (Cout, Cin, kH, kW) and must be re-flattened.
    w1e = p["w1"] * p["bn1_scale"][None, :]                   # (48, 64)
    b1e = p["b1"] * p["bn1_scale"] + p["bn1_shift"]           # (64,)
    w2b = p["w2"].reshape(2, 2, DIM // 4, DIM)                # (pi, pj, 64, 256)
    blk = jnp.einsum('rc,pqcd->pqrd', w1e, w2b)               # (2, 2, 48, 256)
    blk = blk.reshape(2, 2, 4, 4, 3, DIM)
    w_pe = blk.transpose(0, 2, 1, 3, 4, 5).reshape(8 * 8 * 3, DIM)
    b_pe = jnp.einsum('c,pqcd->d', b1e, w2b) + p["b2"]        # (256,)

    def patchify(x):
        B = x.shape[0]
        xh = x.transpose(0, 2, 3, 1)                          # NHWC
        Hh, Ww = xh.shape[1], xh.shape[2]
        xp = xh.reshape(B, Hh // 8, 8, Ww // 8, 8, 3).transpose(0, 1, 3, 2, 4, 5)
        return xp.reshape(B * (Hh // 8) * (Ww // 8), 8 * 8 * 3), Hh // 8, Ww // 8

    ra, Hp, Wp = patchify(a_nchw)
    rb, _, _ = patchify(b_nchw)
    y = linear_pallas(jnp.concatenate([ra, rb], axis=0), w_pe, b_pe)
    B = a_nchw.shape[0]
    y = y.reshape(2, B, Hp, Wp, DIM)
    return y[0], y[1]                                         # NHWC features


def fe_stage(x1, x2, blocks, checks, key):
    B, H, W, C = x1.shape
    n_elem = B * H * W * C
    diff_total = jnp.float32(0.0)
    n1 = len(blocks)
    keep = 0.5
    for num in range(n1):
        kw1, kw2, kn = jax.random.split(jax.random.fold_in(key, num), 3)
        # shared-weight SRCBlock on the stacked [x1; x2] batch
        xs = srcblock_apply(jnp.concatenate([x1, x2], axis=0), blocks[num])
        x1, x2 = xs[:B], xs[B:]
        # WindowMaskSimple / NoiseSimple random tensors (built with jax.random;
        # tiny elementwise XLA work feeding the fused PIM kernel)
        r1 = jnp.floor(jax.random.uniform(kw1, (B, H, W, C), jnp.float32) + keep)
        r2 = jnp.floor(jax.random.uniform(kw2, (B, 1, W, 1), jnp.float32) + keep)
        x1w = (x1 / keep * r1) / keep * r2
        rn = jax.random.uniform(kn, (B, H, W, C), jnp.float32)
        x2w = x2 * ((rn * 2.0 - 1.0) * 0.5 + 1.0)
        y1, y2, s1, s2 = fes_pim_apply(x1, x1w, x2, x2w, checks[num])
        diff_total = diff_total + (s1 + s2) / n_elem
        x1, x2 = y1, y2
    return x1, x2, diff_total / n1 / 2.0


def srcnet_forward(params, a, b, key):
    # eval mode: randomAB skipped, DropPath identity, BN uses running stats
    x1, x2 = patch_embed_pair(a, b, params["pe"])
    x1, x2, diff = fe_stage(x1, x2, params["fes_blocks"], params["fes_checks"], key)
    Dis = repatch_apply(x1, x2, params["repatch"])
    x = pmffm_apply(x1, x2, params["mix"])
    for bp in params["cp_blocks"]:
        x = srcblock_apply(x, bp)
    out = head_apply(x, params["head"])
    return (out,), (Dis,), (diff,), params["sigma"]


# ======================= deterministic parameter init =======================
def _norm(key, shape, scale=0.05):
    return jax.random.normal(key, shape, jnp.float32) * scale


def init_srcblock_params(key, dim):
    ks = jax.random.split(key, 5)
    c4 = 4 * dim
    return dict(
        dw1=_norm(ks[0], (1, dim)), db1=jnp.zeros((1, dim), jnp.float32),
        dw2=_norm(ks[1], (9, dim)), db2=jnp.zeros((1, dim), jnp.float32),
        dw3=_norm(ks[2], (25, dim)), db3=jnp.zeros((1, dim), jnp.float32),
        lnw=jnp.ones((1, dim), jnp.float32), lnb=jnp.zeros((1, dim), jnp.float32),
        pw1=_norm(ks[3], (dim, c4), 0.02), pb1=jnp.zeros((1, c4), jnp.float32),
        gg=jnp.zeros((1, c4), jnp.float32), gb=jnp.zeros((1, c4), jnp.float32),
        pw2=_norm(ks[4], (c4, dim), 0.02), pb2=jnp.zeros((1, dim), jnp.float32),
    )


def init_pim_params(key, dim):
    k1, k2 = jax.random.split(key)
    return dict(w=_norm(k1, (dim, dim), 0.02), b=_norm(k2, (1, dim), 0.02))


def init_params(key):
    keys = jax.random.split(key, 10)
    dim = DIM
    eps = 1e-5  # BatchNorm eps; running_mean=0, running_var=1, gamma=1, beta=0
    pe = dict(
        w1=_norm(keys[0], (4 * 4 * 3, dim // 4), 0.05),
        b1=jnp.zeros((dim // 4,), jnp.float32),
        bn1_scale=jnp.ones((dim // 4,), jnp.float32) / jnp.sqrt(1.0 + eps),
        bn1_shift=jnp.zeros((dim // 4,), jnp.float32),
        w2=_norm(keys[1], (2 * 2 * (dim // 4), dim), 0.05),
        b2=jnp.zeros((dim,), jnp.float32),
    )
    fes_blocks = [init_srcblock_params(k, dim) for k in jax.random.split(keys[2], N1)]
    fes_checks = [init_pim_params(k, dim) for k in jax.random.split(keys[3], N1)]
    cp_blocks = [init_srcblock_params(k, dim) for k in jax.random.split(keys[4], N2)]
    repatch = dict(
        w=_norm(keys[5], (dim, 2 * PATCH * PATCH), 0.05),   # cols ordered (cout, ph, pw)
        b_full=jnp.repeat(jnp.zeros((2,), jnp.float32), PATCH * PATCH),
    )
    mix = dict(
        pw=_norm(keys[6], (CHUNK, M_BRANCH), 0.1),
        pb=jnp.zeros((1, M_BRANCH), jnp.float32),
        rw=_norm(keys[7], (M_BRANCH, CHUNK, CHUNK), 0.1),
        rb=jnp.zeros((M_BRANCH, CHUNK), jnp.float32),
    )
    head = dict(
        up_w=_norm(keys[8], (dim, 32 * PATCH * PATCH), 0.05),  # cols (cout, ph, pw)
        up_b_full=jnp.repeat(jnp.zeros((32,), jnp.float32), PATCH * PATCH),
        bn_scale=jnp.ones((1, 32), jnp.float32) / jnp.sqrt(1.0 + eps),
        bn_shift=jnp.zeros((1, 32), jnp.float32),
        final_w=_norm(keys[9], (32, 2), 0.05),
        final_b=jnp.zeros((1, 2), jnp.float32),
    )
    return dict(pe=pe, fes_blocks=fes_blocks, fes_checks=fes_checks,
                cp_blocks=cp_blocks, repatch=repatch, mix=mix, head=head,
                sigma=jnp.ones((3,), jnp.float32))


if __name__ == "__main__":
    key = jax.random.PRNGKey(0)
    kp, ka, kb, kr = jax.random.split(key, 4)
    params = init_params(kp)
    # small inputs: B=2, 3 channels, 32x32 spatial (divisible by patch_size=8)
    a = jax.random.normal(ka, (2, 3, 32, 32), jnp.float32)
    b = jax.random.normal(kb, (2, 3, 32, 32), jnp.float32)

    (out,), (Dis,), (diff,), sigma = srcnet_forward(params, a, b, kr)
    jax.block_until_ready((out, Dis, diff, sigma))

    assert out.shape == (2, 2, 32, 32)
    assert Dis.shape == (2, 2, 32, 32)
    assert diff.shape == ()
    assert sigma.shape == (3,)
    print("KERNEL_OK")
</pallas_src>

<mosaic_0001>
module attributes {stable_mosaic.version = 11 : i64} {
  func.func @_linear_kernel(%arg0: i32, %arg1: memref<64x192xf32, #tpu.memory_space<vmem>>, %arg2: memref<192x256xf32, #tpu.memory_space<vmem>>, %arg3: memref<1x256xf32, #tpu.memory_space<vmem>>, %arg4: memref<64x256xf32, #tpu.memory_space<vmem>>) attributes {dimension_semantics = [#tpu.dimension_semantics<parallel>], iteration_bounds = array<i64: 1>, scalar_prefetch = 0 : i64, scratch_operands = 0 : i64, tpu.core_type = #tpu.core_type<tc>, window_params = [{transform_indices = @transform_0, window_bounds = array<i64: 64, 192>}, {pipeline_mode = #tpu.pipeline_mode<synchronous>, transform_indices = @transform_1, window_bounds = array<i64: 192, 256>}, {pipeline_mode = #tpu.pipeline_mode<synchronous>, transform_indices = @transform_2, window_bounds = array<i64: 1, 256>}, {transform_indices = @transform_3, window_bounds = array<i64: 64, 256>}]} {
    %c0 = arith.constant 0 : index
    %c0_0 = arith.constant 0 : index
    %0 = vector.load %arg1[%c0, %c0_0] : memref<64x192xf32, #tpu.memory_space<vmem>>, vector<64x192xf32>
    %c0_1 = arith.constant 0 : index
    %c0_2 = arith.constant 0 : index
    %1 = vector.load %arg2[%c0_1, %c0_2] : memref<192x256xf32, #tpu.memory_space<vmem>>, vector<192x256xf32>
    %cst = arith.constant dense<0.000000e+00> : vector<64x256xf32>
    %2 = tpu.matmul %0, %1, %cst {dimension_numbers = #tpu.dot_dimension_numbers<[1], [0], [0], [1], [0, 0, 1, 1], [], []>} : vector<64x192xf32>, vector<192x256xf32>, vector<64x256xf32> -> vector<64x256xf32>
    %c0_3 = arith.constant 0 : index
    %c0_4 = arith.constant 0 : index
    %3 = vector.load %arg3[%c0_3, %c0_4] : memref<1x256xf32, #tpu.memory_space<vmem>>, vector<1x256xf32>
    %4 = vector.broadcast %3 : vector<1x256xf32> to vector<64x256xf32>
    %5 = arith.addf %2, %4 : vector<64x256xf32>
    %c0_5 = arith.constant 0 : index
    %c0_6 = arith.constant 0 : index
    %6 = vector.load %arg4[%c0_5, %c0_6] : memref<64x256xf32, #tpu.memory_space<vmem>>, vector<64x256xf32>
    tpu.vector_store %arg4[%c0_5, %c0_6], %5 {strides = array<i32>} : memref<64x256xf32, #tpu.memory_space<vmem>>, vector<64x256xf32>,
    return
  }
  func.func @transform_0(%arg0: i32) -> (i32, i32) {
    %c0_i32 = arith.constant 0 : i32
    %c0_i32_0 = arith.constant 0 : i32
    return %arg0, %c0_i32 : i32, i32
  }
  func.func @transform_1(%arg0: i32) -> (i32, i32) {
    %c0_i32 = arith.constant 0 : i32
    %c0_i32_0 = arith.constant 0 : i32
    %c0_i32_1 = arith.constant 0 : i32
    return %c0_i32, %c0_i32_0 : i32, i32
  }
  func.func @transform_2(%arg0: i32) -> (i32, i32) {
    %c0_i32 = arith.constant 0 : i32
    %c0_i32_0 = arith.constant 0 : i32
    %c0_i32_1 = arith.constant 0 : i32
    return %c0_i32, %c0_i32_0 : i32, i32
  }
  func.func @transform_3(%arg0: i32) -> (i32, i32) {
    %c0_i32 = arith.constant 0 : i32
    %c0_i32_0 = arith.constant 0 : i32
    return %arg0, %c0_i32 : i32, i32
  }
}

</mosaic_0001>

<bundles_post_ra>
// kernel: tpu_custom_call.1
= control target key start
LH: loop header
LB: loop body
LE: loop exit
PB: predicated region body
PF: predicated region fallthrough
CT: control target
= control target key end

     0   :  { %8 = vsyncpa [#allocation3], 0  ;;  %s562_s0 = inlined_call_operand.hbm [shape: f32[64,192], index: 0, kind: input, shape index: {}]   ;;  %s563_s1 = inlined_call_operand.hbm [shape: f32[192,256], index: 1, kind: input, shape index: {}]   ;;  %s564_s2 = inlined_call_operand.hbm [shape: f32[1,256], index: 2, kind: input, shape index: {}]   ;;  %s565_s3 = inlined_call_operand.hbm [shape: f32[64,256], index: 3, kind: output, shape index: {}]  }
   0x1   :  { %9 = vsyncpa [#allocation6], 0 }
   0x2   :  { %10 = vsyncpa [#allocation4], 0  ;;  %s28_s14 = sshll.u32 %s563_s1, 4  ;;  %s479_s15 = smov [#allocation5]   ;;  %s29_s14 = int_to_ptr.hbm [resolvable:$true] %s28_s14 }
   0x3   :  { %s30_s16 = sshll.u32 %s479_s15, 4  ;;  %s15_s19 = sshll.u32 %s562_s0, 4  ;;  %s31_s16 = int_to_ptr.vmem [resolvable:$true] %s30_s16  ;;  %s16_s19 = int_to_ptr.hbm [resolvable:$true] %s15_s19 }
   0x4   :  { %s480_s20 = smov 256   ;;  %s481_s21 = smov 16  }
   0x5   :  { %36 = dma.hbm_to_vmem [thread:$0]  %s29_s14, 6144, %s31_s16, [#allocation6], %s480_s20, %s480_s20, %s481_s21  }
   0x6   :  { %s482_s22 = smov [#allocation2]   ;;  %s42_s1 = sshll.u32 %s564_s2, 4  ;;  %s43_s1 = int_to_ptr.hbm [resolvable:$true] %s42_s1 }
   0x7   :  { %s17_s23 = sshll.u32 %s482_s22, 4  ;;  %s483_s0 = smov [#allocation7]   ;;  %s18_s23 = int_to_ptr.vmem [resolvable:$true] %s17_s23 }
   0x8   :  { %23 = dma.hbm_to_vmem [thread:$0]  %s16_s19, 2048, %s18_s23, [#allocation3], %s480_s20, %s480_s20, %s481_s21  }
   0x9   :  { %s44_s26 = sshll.u32 %s483_s0, 4  ;;  %s45_s26 = int_to_ptr.vmem [resolvable:$true] %s44_s26 }
   0xa   :  { %47 = dma.hbm_to_vmem [thread:$0]  %s43_s1, 32, %s45_s26, [#allocation6]  }
   0xb   :  { %473 = dma.done.wait [#allocation3], 2048  }
   0xc   :  { %474 = vsyncadd [#allocation3], 4294965248 }
   0xd   :  { %475 = dma.done.wait [#allocation6], 6176  }
   0xe   :  { %476 = vsyncadd [#allocation6], 4294961120  ;;  %v107_v0 = vld [vmem:[#allocation5 + $0xf8] sm:$0xff]  ;;  %v105_v1 = vld [vmem:[#allocation5 + $0xe8] sm:$0xff]  ;;  %vm130_vm0 = vcmask 523264   ;;  %s484_s2 = smov [#allocation8]  }
   0xf   :  { %237 = vmatpush.msra.mxu2 %v107_v0  ;;  %v106_v2 = vld [vmem:[#allocation5 + $0xf0] sm:$0xff]  ;;  %v104_v3 = vld [vmem:[#allocation5 + $0xe0] sm:$0xff]  ;;  %v103_v4 = vld [vmem:[#allocation5 + $0xd8] sm:$0xff]  ;;  %s339_s27 = sshll.u32 %s484_s2, 4  ;;  %s341_s30 = sshll.u32 %s565_s3, 4  ;;  %s340_s27 = int_to_ptr.vmem [resolvable:$true] %s339_s27  ;;  %s342_s30 = int_to_ptr.hbm [resolvable:$true] %s341_s30 }
  0x10   :  { %155 = vmatpush.msra.mxu0 %v106_v2  ;;  %v102_v5 = vld [vmem:[#allocation5 + $0xd0] sm:$0xff]  ;;  %v101_v6 = vld [vmem:[#allocation5 + $0xc8] sm:$0xff]  ;;  %v100_v7 = vld [vmem:[#allocation5 + $0xc0] sm:$0xff] }
  0x11   :  { %238 = vmatpush.msra.mxu2 %v105_v1  ;;  %v123_v8 = vld [vmem:[#allocation5 + $0x178] sm:$0xff]  ;;  %v121_v10 = vld [vmem:[#allocation5 + $0x168] sm:$0xff]  ;;  %v98_v11 = vld [vmem:[#allocation5 + $0xb0] sm:$0xff] }
  0x12   :  { %156 = vmatpush.msra.mxu0 %v104_v3  ;;  %v99_v9 = vld [vmem:[#allocation5 + $0xb8] sm:$0xff]  ;;  %286 = vmatpush.msra.mxu3 %v123_v8  ;;  %v97_v13 = vld [vmem:[#allocation5 + $0xa8] sm:$0xff]  ;;  %v122_v14 = vld [vmem:[#allocation5 + $0x170] sm:$0xff] }
  0x13   :  { %239 = vmatpush.msra.mxu2 %v103_v4  ;;  %v119_v12 = vld [vmem:[#allocation5 + $0x158] sm:$0xff]  ;;  %v96_v15 = vld [vmem:[#allocation5 + $0xa0] sm:$0xff]  ;;  %204 = vmatpush.msra.mxu1 %v122_v14  ;;  %v117_v16 = vld [vmem:[#allocation5 + $0x148] sm:$0xff] }
  0x14   :  { %157 = vmatpush.msra.mxu0 %v102_v5  ;;  %287 = vmatpush.msra.mxu3 %v121_v10  ;;  %v120_v17 = vld [vmem:[#allocation5 + $0x160] sm:$0xff]  ;;  %v95_v18 = vld [vmem:[#allocation5 + $0x98] sm:$0xff]  ;;  %v94_v19 = vld [vmem:[#allocation5 + $0x90] sm:$0xff] }
  0x15   :  { %240 = vmatpush.msra.mxu2 %v101_v6  ;;  %205 = vmatpush.msra.mxu1 %v120_v17  ;;  %v115_v20 = vld [vmem:[#allocation5 + $0x138] sm:$0xff]  ;;  %v118_v21 = vld [vmem:[#allocation5 + $0x150] sm:$0xff]  ;;  %v93_v22 = vld [vmem:[#allocation5 + $0x88] sm:$0xff] }
  0x16   :  { %158 = vmatpush.msra.mxu0 %v100_v7  ;;  %288 = vmatpush.msra.mxu3 %v119_v12  ;;  %v116_v23 = vld [vmem:[#allocation5 + $0x140] sm:$0xff]  ;;  %v113_v25 = vld [vmem:[#allocation5 + $0x128] sm:$0xff]  ;;  %v91_v26 = vld [vmem:[#allocation5 + $0x78] sm:$0xff] }
  0x17   :  { %241 = vmatpush.msra.mxu2 %v99_v9  ;;  %v92_v24 = vld [vmem:[#allocation5 + $0x80] sm:$0xff]  ;;  %206 = vmatpush.msra.mxu1 %v118_v21  ;;  %v114_v27 = vld [vmem:[#allocation5 + $0x130] sm:$0xff]  ;;  %v111_v29 = vld [vmem:[#allocation5 + $0x118] sm:$0xff] }
  0x18   :  { %159 = vmatpush.msra.mxu0 %v98_v11  ;;  %289 = vmatpush.msra.mxu3 %v117_v16  ;;  %v90_v28 = vld [vmem:[#allocation5 + $0x70] sm:$0xff]  ;;  %v89_v30 = vld [vmem:[#allocation5 + $0x68] sm:$0xff]  ;;  %v112_v31 = vld [vmem:[#allocation5 + $0x120] sm:$0xff] }
  0x19   :  { %242 = vmatpush.msra.mxu2 %v97_v13  ;;  %207 = vmatpush.msra.mxu1 %v116_v23  ;;  %v88_v32 = vld [vmem:[#allocation5 + $0x60] sm:$0xff]  ;;  %v109_v33 = vld [vmem:[#allocation5 + $0x108] sm:$0xff]  ;;  %v87_v34 = vld [vmem:[#allocation5 + $0x58] sm:$0xff] }
  0x1a   :  { %160 = vmatpush.msra.mxu0 %v96_v15  ;;  %290 = vmatpush.msra.mxu3 %v115_v20  ;;  %v61_v35 = vld [vmem:[#allocation2 + $0x8] sm:$0xff]  ;;  %v86_v36 = vld [vmem:[#allocation5 + $0x50] sm:$0xff]  ;;  %v84_v39 = vld [vmem:[#allocation5 + $0x40] sm:$0xff] }
  0x1b   :  { %243 = vmatpush.msra.mxu2 %v95_v18  ;;  %208 = vmatpush.msra.mxu1 %v114_v27  ;;  %v110_v37 = vld [vmem:[#allocation5 + $0x110] sm:$0xff]  ;;  %v85_v38 = vld [vmem:[#allocation5 + $0x48] sm:$0xff]  ;;  %v108_v40 = vld [vmem:[#allocation5 + $0x100] sm:$0xff] }
  0x1c   :  { %161 = vmatpush.msra.mxu0 %v94_v19  ;;  %291 = vmatpush.msra.mxu3 %v113_v25  ;;  %v83_v41 = vld [vmem:[#allocation5 + $0x38] sm:$0xff]  ;;  %v82_v42 = vld [vmem:[#allocation5 + $0x30] sm:$0xff]  ;;  %v81_v43 = vld [vmem:[#allocation5 + $0x28] sm:$0xff] }
  0x1d   :  { %244 = vmatpush.msra.mxu2 %v93_v22  ;;  %209 = vmatpush.msra.mxu1 %v112_v31  ;;  %v80_v44 = vld [vmem:[#allocation5 + $0x20] sm:$0xff]  ;;  %v79_v45 = vld [vmem:[#allocation5 + $0x18] sm:$0xff]  ;;  %v78_v47 = vld [vmem:[#allocation5 + $0x10] sm:$0xff] }
  0x1e   :  { %162 = vmatpush.msra.mxu0 %v92_v24  ;;  %292 = vmatpush.msra.mxu3 %v111_v29  ;;  %v63_v46 = vld [vmem:[#allocation2 + $0x18] sm:$0xff]  ;;  %v77_v48 = vld [vmem:[#allocation5 + $0x8] sm:$0xff]  ;;  %v60_v49 = vld [vmem:[#allocation2] sm:$0xff] }
  0x1f   :  { %245 = vmatpush.msra.mxu2 %v91_v26  ;;  %210 = vmatpush.msra.mxu1 %v110_v37  ;;  %v76_v50 = vld [vmem:[#allocation5] sm:$0xff]  ;;  %v65_v51 = vld [vmem:[#allocation2 + $0x28] sm:$0xff]  ;;  %v62_v52 = vld [vmem:[#allocation2 + $0x10] sm:$0xff] }
  0x20   :  { %163 = vmatpush.msra.mxu0 %v90_v28  ;;  %293 = vmatpush.msra.mxu3 %v109_v33  ;;  %v67_v53 = vld [vmem:[#allocation2 + $0x38] sm:$0xff]  ;;  %v64_v54 = vld [vmem:[#allocation2 + $0x20] sm:$0xff]  ;;  %v69_v55 = vld [vmem:[#allocation2 + $0x48] sm:$0xff] }
  0x21   :  { %246 = vmatpush.msra.mxu2 %v89_v30  ;;  %363 = vmatmul.msk.f32.vlgmr.msra.gmra.mxu3 %vm130_vm0, %v61_v35  ;;  %v66_v56 = vld [vmem:[#allocation2 + $0x30] sm:$0xff]  ;;  %v71_v57 = vld [vmem:[#allocation2 + $0x58] sm:$0xff]  ;;  %v68_v58 = vld [vmem:[#allocation2 + $0x40] sm:$0xff] }
  0x22   :  { %164 = vmatpush.msra.mxu0 %v88_v32  ;;  %211 = vmatpush.msra.mxu1 %v108_v40  ;;  %v73_v59 = vld [vmem:[#allocation2 + $0x68] sm:$0xff]  ;;  %v70_v60 = vld [vmem:[#allocation2 + $0x50] sm:$0xff]  ;;  %v75_v61 = vld [vmem:[#allocation2 + $0x78] sm:$0xff] }
  0x23   :  { %247 = vmatpush.msra.mxu2 %v87_v34  ;;  %355 = vmatmul.msk.f32.vlgmr.msra.gmra.mxu1 %vm130_vm0, %v61_v35  ;;  %v72_v62 = vld [vmem:[#allocation2 + $0x60] sm:$0xff]  ;;  %v74_v63 = vld [vmem:[#allocation2 + $0x70] sm:$0xff] }
  0x24   :  { %165 = vmatpush.msra.mxu0 %v86_v36  ;;  %v124_v1 = vld [vmem:[#allocation7] sm:$0x3] }
  0x25   :  { %248 = vmatpush.msra.mxu2 %v85_v38  ;;  %v536_v3 = vperm.slane %v124_v1, 0  ;;  %v539_v7 = vperm.slane %v124_v1, 1 }
  0x26   :  { %166 = vmatpush.msra.mxu0 %v84_v39 }
  0x27   :  { %249 = vmatpush.msra.mxu2 %v83_v41 }
  0x28   :  { %167 = vmatpush.msra.mxu0 %v82_v42 }
  0x29   :  { %250 = vmatpush.msra.mxu2 %v81_v43  ;;  %364 = vmatmul.msk.f32.gmra.mxu3 %vm130_vm0, %v63_v46 }
  0x2a   :  { %168 = vmatpush.msra.mxu0 %v80_v44 }
  0x2b   :  { %251 = vmatpush.msra.mxu2 %v79_v45  ;;  %356 = vmatmul.msk.f32.gmra.mxu1 %vm130_vm0, %v63_v46 }
  0x2c   :  { %169 = vmatpush.msra.mxu0 %v78_v47 }
  0x2d   :  { %252 = vmatpush.msra.mxu2 %v77_v48 }
  0x2e   :  { %253 = vmatmul.f32.vlgmr.msra.gmra.mxu2 %v60_v49  ;;  %170 = vmatpush.msra.mxu0 %v76_v50 }
  0x2f   :  { %171 = vmatmul.f32.vlgmr.msra.gmra.mxu0 %v60_v49 }
  0x31   :  { %365 = vmatmul.msk.f32.gmra.mxu3 %vm130_vm0, %v65_v51 }
  0x33   :  { %357 = vmatmul.msk.f32.gmra.mxu1 %vm130_vm0, %v65_v51 }
  0x36   :  { %256 = vmatmul.f32.gmra.mxu2 %v62_v52 }
  0x37   :  { %174 = vmatmul.f32.gmra.mxu0 %v62_v52 }
  0x39   :  { %366 = vmatmul.msk.f32.gmra.mxu3 %vm130_vm0, %v67_v53 }
  0x3b   :  { %358 = vmatmul.msk.f32.gmra.mxu1 %vm130_vm0, %v67_v53 }
  0x3e   :  { %259 = vmatmul.f32.gmra.mxu2 %v64_v54 }
  0x3f   :  { %177 = vmatmul.f32.gmra.mxu0 %v64_v54 }
  0x41   :  { %367 = vmatmul.msk.f32.gmra.mxu3 %vm130_vm0, %v69_v55 }
  0x43   :  { %359 = vmatmul.msk.f32.gmra.mxu1 %vm130_vm0, %v69_v55 }
  0x46   :  { %262 = vmatmul.f32.gmra.mxu2 %v66_v56 }
  0x47   :  { %180 = vmatmul.f32.gmra.mxu0 %v66_v56 }
  0x49   :  { %368 = vmatmul.msk.f32.gmra.mxu3 %vm130_vm0, %v71_v57 }
  0x4b   :  { %360 = vmatmul.msk.f32.gmra.mxu1 %vm130_vm0, %v71_v57 }
  0x4e   :  { %265 = vmatmul.f32.gmra.mxu2 %v68_v58 }
  0x4f   :  { %183 = vmatmul.f32.gmra.mxu0 %v68_v58 }
  0x51   :  { %369 = vmatmul.msk.f32.gmra.mxu3 %vm130_vm0, %v73_v59 }
  0x53   :  { %361 = vmatmul.msk.f32.gmra.mxu1 %vm130_vm0, %v73_v59 }
  0x56   :  { %268 = vmatmul.f32.gmra.mxu2 %v70_v60 }
  0x57   :  { %186 = vmatmul.f32.gmra.mxu0 %v70_v60 }
  0x59   :  { %370 = vmatmul.msk.f32.gmra.mxu3 %vm130_vm0, %v75_v61 }
  0x5b   :  { %362 = vmatmul.msk.f32.gmra.mxu1 %vm130_vm0, %v75_v61 }
  0x5e   :  { %271 = vmatmul.f32.gmra.mxu2 %v72_v62 }
  0x5f   :  { %189 = vmatmul.f32.gmra.mxu0 %v72_v62 }
  0x66   :  { %274 = vmatmul.f32.gmra.mxu2 %v74_v63 }
  0x67   :  { %192 = vmatmul.f32.gmra.mxu0 %v74_v63 }
  0xa0   :  { %v213_v0 = vpop.f32.mrf.mxu1 }
  0xa4   :  { %v295_v2 = vpop.f32.mrf.mxu3 }
  0xa8   :  { %v216_v5 = vpop.f32.mrf.mxu1 }
  0xac   :  { %v172_v4 = vpop.f32.mrf.mxu0  ;;  %v298_v8 = vpop.f32.mrf.mxu3 }
  0xad   :  { %v173_v6 = vadd.f32 %v172_v4, %v536_v3 }
  0xaf   :  { %v214_v9 = vadd.f32 %v213_v0, %v173_v6 }
  0xb0   :  { %v219_v14 = vpop.f32.mrf.mxu1 }
  0xb1   :  { %v254_v10 = vpop.f32.mrf.mxu2  ;;  %319 = vst [vmem:[#allocation8] sm:$0xff] %v214_v9 }
  0xb2   :  { %v255_v11 = vadd.f32 %v254_v10, %v539_v7 }
  0xb4   :  { %v296_v12 = vadd.f32 %v295_v2, %v255_v11  ;;  %v175_v13 = vpop.f32.mrf.mxu0  ;;  %v301_v17 = vpop.f32.mrf.mxu3 }
  0xb5   :  { %v176_v15 = vadd.f32 %v175_v13, %v536_v3 }
  0xb6   :  { %320 = vst [vmem:[#allocation8 + $0x8] sm:$0xff] %v296_v12 }
  0xb7   :  { %v217_v16 = vadd.f32 %v216_v5, %v176_v15 }
  0xb8   :  { %v222_v22 = vpop.f32.mrf.mxu1 }
  0xb9   :  { %v257_v18 = vpop.f32.mrf.mxu2  ;;  %321 = vst [vmem:[#allocation8 + $0x10] sm:$0xff] %v217_v16 }
  0xba   :  { %v258_v19 = vadd.f32 %v257_v18, %v539_v7 }
  0xbc   :  { %v299_v20 = vadd.f32 %v298_v8, %v258_v19  ;;  %v178_v21 = vpop.f32.mrf.mxu0  ;;  %v304_v26 = vpop.f32.mrf.mxu3 }
  0xbd   :  { %v179_v23 = vadd.f32 %v178_v21, %v536_v3 }
  0xbe   :  { %322 = vst [vmem:[#allocation8 + $0x18] sm:$0xff] %v299_v20 }
  0xbf   :  { %v220_v24 = vadd.f32 %v219_v14, %v179_v23 }
  0xc0   :  { %v225_v31 = vpop.f32.mrf.mxu1 }
  0xc1   :  { %v260_v25 = vpop.f32.mrf.mxu2  ;;  %323 = vst [vmem:[#allocation8 + $0x20] sm:$0xff] %v220_v24 }
  0xc2   :  { %v261_v27 = vadd.f32 %v260_v25, %v539_v7 }
  0xc4   :  { %v302_v28 = vadd.f32 %v301_v17, %v261_v27  ;;  %v181_v29 = vpop.f32.mrf.mxu0  ;;  %v307_v35 = vpop.f32.mrf.mxu3 }
  0xc5   :  { %v182_v30 = vadd.f32 %v181_v29, %v536_v3 }
  0xc6   :  { %324 = vst [vmem:[#allocation8 + $0x28] sm:$0xff] %v302_v28 }
  0xc7   :  { %v223_v32 = vadd.f32 %v222_v22, %v182_v30 }
  0xc8   :  { %v228_v40 = vpop.f32.mrf.mxu1 }
  0xc9   :  { %v263_v33 = vpop.f32.mrf.mxu2  ;;  %325 = vst [vmem:[#allocation8 + $0x30] sm:$0xff] %v223_v32 }
  0xca   :  { %v264_v34 = vadd.f32 %v263_v33, %v539_v7 }
  0xcc   :  { %v305_v36 = vadd.f32 %v304_v26, %v264_v34  ;;  %v184_v37 = vpop.f32.mrf.mxu0  ;;  %v310_v46 = vpop.f32.mrf.mxu3 }
  0xcd   :  { %v185_v38 = vadd.f32 %v184_v37, %v536_v3 }
  0xce   :  { %326 = vst [vmem:[#allocation8 + $0x38] sm:$0xff] %v305_v36 }
  0xcf   :  { %v226_v39 = vadd.f32 %v225_v31, %v185_v38 }
  0xd0   :  { %v231_v50 = vpop.f32.mrf.mxu1 }
  0xd1   :  { %v266_v41 = vpop.f32.mrf.mxu2  ;;  %327 = vst [vmem:[#allocation8 + $0x40] sm:$0xff] %v226_v39 }
  0xd2   :  { %v267_v42 = vadd.f32 %v266_v41, %v539_v7 }
  0xd4   :  { %v308_v43 = vadd.f32 %v307_v35, %v267_v42  ;;  %v187_v44 = vpop.f32.mrf.mxu0  ;;  %v313_v55 = vpop.f32.mrf.mxu3 }
  0xd5   :  { %v188_v45 = vadd.f32 %v187_v44, %v536_v3 }
  0xd6   :  { %328 = vst [vmem:[#allocation8 + $0x48] sm:$0xff] %v308_v43 }
  0xd7   :  { %v229_v47 = vadd.f32 %v228_v40, %v188_v45 }
  0xd8   :  { %v234_v60 = vpop.f32.mrf.mxu1 }
  0xd9   :  { %v269_v48 = vpop.f32.mrf.mxu2  ;;  %329 = vst [vmem:[#allocation8 + $0x50] sm:$0xff] %v229_v47 }
  0xda   :  { %v270_v49 = vadd.f32 %v269_v48, %v539_v7 }
  0xdc   :  { %v311_v51 = vadd.f32 %v310_v46, %v270_v49  ;;  %v190_v52 = vpop.f32.mrf.mxu0  ;;  %v316_v0 = vpop.f32.mrf.mxu3 }
  0xdd   :  { %v191_v53 = vadd.f32 %v190_v52, %v536_v3 }
  0xde   :  { %330 = vst [vmem:[#allocation8 + $0x58] sm:$0xff] %v311_v51 }
  0xdf   :  { %v232_v54 = vadd.f32 %v231_v50, %v191_v53 }
  0xe1   :  { %v272_v56 = vpop.f32.mrf.mxu2  ;;  %331 = vst [vmem:[#allocation8 + $0x60] sm:$0xff] %v232_v54 }
  0xe2   :  { %v273_v57 = vadd.f32 %v272_v56, %v539_v7 }
  0xe4   :  { %v314_v58 = vadd.f32 %v313_v55, %v273_v57  ;;  %v193_v59 = vpop.f32.mrf.mxu0 }
  0xe5   :  { %v194_v61 = vadd.f32 %v193_v59, %v536_v3 }
  0xe6   :  { %332 = vst [vmem:[#allocation8 + $0x68] sm:$0xff] %v314_v58 }
  0xe7   :  { %v235_v62 = vadd.f32 %v234_v60, %v194_v61 }
  0xe9   :  { %v275_v63 = vpop.f32.mrf.mxu2  ;;  %333 = vst [vmem:[#allocation8 + $0x70] sm:$0xff] %v235_v62 }
  0xea   :  { %v276_v1 = vadd.f32 %v275_v63, %v539_v7 }
  0xec   :  { %v317_v2 = vadd.f32 %v316_v0, %v276_v1 }
  0xee   :  { %334 = vst [vmem:[#allocation8 + $0x78] sm:$0xff] %v317_v2 }
  0xef   :  { %347 = dma.vmem_to_hbm [thread:$0]  %s340_s27, 2048, %s342_s30, [#allocation4], %s480_s20, %s480_s20, %s481_s21  }
  0xf0   :  { %477 = dma.done.wait [#allocation4], 2048  }
  0xf1   :  { %478 = vsyncadd [#allocation4], 4294965248 }
  0xf2   :  { %352 = vsyncpa [#allocation3], 1 }
  0xf3   :  { %353 = vsyncpa [#allocation6], 1 }
  0xf4   :  { %354 = vsyncpa [#allocation4], 1 }

</bundles_post_ra>
